<compile_context>
chip_gen: v7x
topology: tpu7x:2x2x1
jax: 0.10.0
libtpu: 0.0.40
codegen_flags: <defaults>
</compile_context>

<pallas_src>
import functools
import math

import jax
import jax.numpy as jnp
from jax.experimental import pallas as pl
from jax.experimental.pallas import tpu as pltpu


# ------------------------- fused embeddings kernel ---------------------------
def _dit_embed_kernel(xp_ref, wp_ref, pospb_ref, freq_ref, w1_ref, b1_ref,
                      w2_ref, clspb_ref, tok_ref, cond_ref, *,
                      use_tanh_gelu=False):
    # xp_ref:    (B*P, pd)  flattened patches (batch folded into sublanes)
    # wp_ref:    (pd, D)    patch_proj weight (transposed vs PyTorch), f32
    # pospb_ref: (B*P, D)   pos_embeds + b_patch, tiled over batch
    # freq_ref:  (B, D)     sinusoidal time embedding
    # w1_ref:    (D, 4D)    time-MLP weight 1 (f32 or bf16)
    # b1_ref:    (1, 4D)    time-MLP bias 1 (f32)
    # w2_ref:    (4D, D)    time-MLP weight 2 (f32 or bf16)
    # clspb_ref: (B, D)     gathered class embedding + b2
    # tok_ref:   (B*P, D)   output tokens
    # cond_ref:  (B, D)     output conditioning

    # ---- patch projection: K=pd (=4) contraction done as VPU broadcast-FMAs,
    #      accumulating directly on top of (pos + bias). ----
    x = xp_ref[...]                                   # (B*P, pd)
    w = wp_ref[...].astype(jnp.float32)               # (pd, D)
    acc = pospb_ref[...]                              # (B*P, D)
    pd = x.shape[1]
    for k in range(pd):                               # static unroll (pd == 4)
        acc = acc + x[:, k:k + 1] * w[k:k + 1, :]
    tok_ref[...] = acc

    # ---- conditioning: Linear -> GELU -> Linear, + class embedding ----
    cdt = w1_ref.dtype                                # f32 or bf16 (flag)
    h = jnp.dot(freq_ref[...].astype(cdt), w1_ref[...],
                preferred_element_type=jnp.float32) + b1_ref[...]
    if use_tanh_gelu:
        # tanh approximation -> transcendental goes to the EUP slot
        h = 0.5 * h * (1.0 + jnp.tanh(
            math.sqrt(2.0 / math.pi) * (h + 0.044715 * h * h * h)))
    else:
        # exact (erf-based) GELU, matching torch.nn.GELU default
        h = 0.5 * h * (1.0 + jax.lax.erf(h * (1.0 / math.sqrt(2.0))))
    y = jnp.dot(h.astype(cdt), w2_ref[...], preferred_element_type=jnp.float32)
    cond_ref[...] = y + clspb_ref[...]


def dit_embed_fused(xp_flat, w_patch, pos_plus_bias_rows, freq, w1, b1, w2,
                    cls_plus_b2, *, use_tanh_gelu=False):
    BP, pd = xp_flat.shape
    D = w_patch.shape[1]
    B = freq.shape[0]
    H = w1.shape[1]
    kernel = functools.partial(_dit_embed_kernel, use_tanh_gelu=use_tanh_gelu)
    tok, cond = pl.pallas_call(
        kernel,
        out_shape=(jax.ShapeDtypeStruct((BP, D), jnp.float32),
                   jax.ShapeDtypeStruct((B, D), jnp.float32)),
        grid=(1,),  # single grid point: all work fused, one launch
        in_specs=[
            pl.BlockSpec((BP, pd), lambda i: (0, 0)),
            pl.BlockSpec((pd, D), lambda i: (0, 0)),
            pl.BlockSpec((BP, D), lambda i: (0, 0)),
            pl.BlockSpec((B, D), lambda i: (0, 0)),
            pl.BlockSpec((D, H), lambda i: (0, 0)),
            pl.BlockSpec((1, H), lambda i: (0, 0)),
            pl.BlockSpec((H, D), lambda i: (0, 0)),
            pl.BlockSpec((B, D), lambda i: (0, 0)),
        ],
        out_specs=(pl.BlockSpec((BP, D), lambda i: (0, 0)),
                   pl.BlockSpec((B, D), lambda i: (0, 0))),
        compiler_params=pltpu.CompilerParams(
            dimension_semantics=("arbitrary",),   # sub-us kernel: single core
            vmem_limit_bytes=32 * 1024 * 1024),
    )(xp_flat, w_patch, pos_plus_bias_rows, freq, w1, b1, w2, cls_plus_b2)
    return tok, cond


# ------------------------------- module wrapper -------------------------------
class DiTEmbeddingsPallas:
    def __init__(self, key, D=128, t=1, h=4, w=4, ch=4, num_classes=10,
                 mlp_weight_dtype=jnp.float32, use_tanh_gelu=False):
        self.D, self.t, self.h, self.w, self.ch = D, t, h, w, ch
        self.num_classes = num_classes
        self.num_patches = (h // t) * (w // t)
        self.mlp_weight_dtype = mlp_weight_dtype
        self.use_tanh_gelu = use_tanh_gelu
        pd = t * t * ch

        ks = jax.random.split(key, 8)
        s = lambda fan_in: 1.0 / math.sqrt(fan_in)
        # f32 master weights, stored (in, out) (transposed vs PyTorch Linear)
        self.w_patch = jax.random.uniform(ks[0], (pd, D), jnp.float32, -s(pd), s(pd))
        self.b_patch = jax.random.uniform(ks[1], (1, D), jnp.float32, -s(pd), s(pd))
        self.w1 = jax.random.uniform(ks[2], (D, 4 * D), jnp.float32, -s(D), s(D))
        self.b1 = jax.random.uniform(ks[3], (1, 4 * D), jnp.float32, -s(D), s(D))
        self.w2 = jax.random.uniform(ks[4], (4 * D, D), jnp.float32, -s(4 * D), s(4 * D))
        self.b2 = jax.random.uniform(ks[5], (1, D), jnp.float32, -s(4 * D), s(4 * D))
        self.class_table = jax.random.normal(ks[6], (num_classes, D), jnp.float32)
        self.pos_embeds = jax.random.normal(ks[7], (self.num_patches, D), jnp.float32)
        # fold the patch-proj bias into the positional embedding once
        self.pos_plus_bias = self.pos_embeds + self.b_patch          # (P, D)

    def freq_embed(self, t):
        half = self.D // 2
        emb = math.log(10000.0) / (half - 1)
        emb = jnp.exp(jnp.arange(half, dtype=jnp.float32) * -emb)
        emb = t[:, None] * emb[None, :]
        return jnp.concatenate([jnp.sin(emb), jnp.cos(emb)], axis=-1)

    def __call__(self, x, t, c):
        # x: (B, ch, h, w) NCHW, t: (B,) float, c: (B,) int
        B = x.shape[0]
        tt = self.t
        P = self.num_patches
        # NCHW -> NHWC -> (B*P, t*t*ch): batch flattened into sublanes
        xp = jnp.transpose(x, (0, 2, 3, 1)).reshape(
            B * P, tt * tt * self.ch).astype(jnp.float32)
        pos_rows = jnp.tile(self.pos_plus_bias, (B, 1))              # (B*P, D)

        freq = self.freq_embed(t.astype(jnp.float32))                # (B, D)
        # class-embedding gather (tiny, data-dependent) + fold b2 in
        cls_pb = jnp.take(self.class_table, c, axis=0) + self.b2     # (B, D)

        w1 = self.w1.astype(self.mlp_weight_dtype)
        w2 = self.w2.astype(self.mlp_weight_dtype)

        tok_flat, cond = dit_embed_fused(
            xp, self.w_patch, pos_rows, freq, w1, self.b1, w2, cls_pb,
            use_tanh_gelu=self.use_tanh_gelu)
        tokens = tok_flat.reshape(B, P, self.D)
        return tokens, cond

    # pure-JAX reference (always f32, exact erf GELU) for verification
    def reference(self, x, t, c):
        B = x.shape[0]
        xp = jnp.transpose(x, (0, 2, 3, 1)).reshape(
            B, self.num_patches, self.t * self.t * self.ch).astype(jnp.float32)
        tokens = xp @ self.w_patch + self.b_patch + self.pos_embeds[None]
        freq = self.freq_embed(t.astype(jnp.float32))
        h = freq @ self.w1 + self.b1
        h = 0.5 * h * (1.0 + jax.lax.erf(h / math.sqrt(2.0)))
        cond = h @ self.w2 + self.b2 + jnp.take(self.class_table, c, axis=0)
        return tokens, cond


if __name__ == "__main__":
    key = jax.random.PRNGKey(0)
    k_param, k_x, k_t, k_c = jax.random.split(key, 4)

    # small shapes: B=2, ch=4, h=w=4 (t=1 -> 16 patches, B*P=32), D=128
    B, ch, H, W, D = 2, 4, 4, 4, 128
    model = DiTEmbeddingsPallas(k_param, D=D, t=1, h=H, w=W, ch=ch, num_classes=10)

    x = jax.random.normal(k_x, (B, ch, H, W), jnp.float32)
    t = jax.random.uniform(k_t, (B,), jnp.float32, 0.0, 1000.0)
    c = jax.random.randint(k_c, (B,), 0, 10, jnp.int32)

    # f32 path: must match the reference tightly
    tokens, cond = model(x, t, c)
    jax.block_until_ready((tokens, cond))

    ref_tokens, ref_cond = model.reference(x, t, c)
    assert tokens.shape == (B, model.num_patches, D)
    assert cond.shape == (B, D)
    assert jnp.allclose(tokens, ref_tokens, atol=1e-4, rtol=1e-4)
    assert jnp.allclose(cond, ref_cond, atol=1e-4, rtol=1e-4)

    # optional bf16 weight-streaming path for the time-MLP (looser tolerance)
    model.mlp_weight_dtype = jnp.bfloat16
    tokens_bf, cond_bf = model(x, t, c)
    jax.block_until_ready((tokens_bf, cond_bf))
    assert jnp.allclose(tokens_bf, ref_tokens, atol=1e-4, rtol=1e-4)  # f32 path
    assert jnp.allclose(cond_bf, ref_cond, atol=5e-2, rtol=5e-2)

    print("KERNEL_OK")
</pallas_src>

<mosaic_0001>
module attributes {stable_mosaic.version = 11 : i64} {
  func.func @_dit_embed_kernel(%arg0: i32, %arg1: memref<32x4xf32, #tpu.memory_space<vmem>>, %arg2: memref<4x128xf32, #tpu.memory_space<vmem>>, %arg3: memref<32x128xf32, #tpu.memory_space<vmem>>, %arg4: memref<2x128xf32, #tpu.memory_space<vmem>>, %arg5: memref<128x512xf32, #tpu.memory_space<vmem>>, %arg6: memref<1x512xf32, #tpu.memory_space<vmem>>, %arg7: memref<512x128xf32, #tpu.memory_space<vmem>>, %arg8: memref<2x128xf32, #tpu.memory_space<vmem>>, %arg9: memref<32x128xf32, #tpu.memory_space<vmem>>, %arg10: memref<2x128xf32, #tpu.memory_space<vmem>>) attributes {dimension_semantics = [#tpu.dimension_semantics<arbitrary>], iteration_bounds = array<i64: 1>, scalar_prefetch = 0 : i64, scratch_operands = 0 : i64, tpu.core_type = #tpu.core_type<tc>, window_params = [{pipeline_mode = #tpu.pipeline_mode<synchronous>, transform_indices = @transform_0, window_bounds = array<i64: 32, 4>}, {pipeline_mode = #tpu.pipeline_mode<synchronous>, transform_indices = @transform_1, window_bounds = array<i64: 4, 128>}, {pipeline_mode = #tpu.pipeline_mode<synchronous>, transform_indices = @transform_2, window_bounds = array<i64: 32, 128>}, {pipeline_mode = #tpu.pipeline_mode<synchronous>, transform_indices = @transform_3, window_bounds = array<i64: 2, 128>}, {pipeline_mode = #tpu.pipeline_mode<synchronous>, transform_indices = @transform_4, window_bounds = array<i64: 128, 512>}, {pipeline_mode = #tpu.pipeline_mode<synchronous>, transform_indices = @transform_5, window_bounds = array<i64: 1, 512>}, {pipeline_mode = #tpu.pipeline_mode<synchronous>, transform_indices = @transform_6, window_bounds = array<i64: 512, 128>}, {pipeline_mode = #tpu.pipeline_mode<synchronous>, transform_indices = @transform_7, window_bounds = array<i64: 2, 128>}, {pipeline_mode = #tpu.pipeline_mode<synchronous>, transform_indices = @transform_8, window_bounds = array<i64: 32, 128>}, {pipeline_mode = #tpu.pipeline_mode<synchronous>, transform_indices = @transform_9, window_bounds = array<i64: 2, 128>}]} {
    %c0 = arith.constant 0 : index
    %c0_0 = arith.constant 0 : index
    %0 = vector.load %arg1[%c0, %c0_0] : memref<32x4xf32, #tpu.memory_space<vmem>>, vector<32x4xf32>
    %c0_1 = arith.constant 0 : index
    %c0_2 = arith.constant 0 : index
    %1 = vector.load %arg2[%c0_1, %c0_2] : memref<4x128xf32, #tpu.memory_space<vmem>>, vector<4x128xf32>
    %c0_3 = arith.constant 0 : index
    %c0_4 = arith.constant 0 : index
    %2 = vector.load %arg3[%c0_3, %c0_4] : memref<32x128xf32, #tpu.memory_space<vmem>>, vector<32x128xf32>
    %3 = vector.extract_strided_slice %0 {offsets = [0, 0], sizes = [32, 1], strides = [1, 1]} : vector<32x4xf32> to vector<32x1xf32>
    %4 = vector.extract_strided_slice %1 {offsets = [0, 0], sizes = [1, 128], strides = [1, 1]} : vector<4x128xf32> to vector<1x128xf32>
    %5 = vector.broadcast %3 : vector<32x1xf32> to vector<32x128xf32>
    %6 = vector.broadcast %4 : vector<1x128xf32> to vector<32x128xf32>
    %7 = arith.mulf %5, %6 : vector<32x128xf32>
    %8 = arith.addf %2, %7 : vector<32x128xf32>
    %9 = vector.extract_strided_slice %0 {offsets = [0, 1], sizes = [32, 1], strides = [1, 1]} : vector<32x4xf32> to vector<32x1xf32>
    %10 = vector.extract_strided_slice %1 {offsets = [1, 0], sizes = [1, 128], strides = [1, 1]} : vector<4x128xf32> to vector<1x128xf32>
    %11 = vector.broadcast %9 : vector<32x1xf32> to vector<32x128xf32>
    %12 = vector.broadcast %10 : vector<1x128xf32> to vector<32x128xf32>
    %13 = arith.mulf %11, %12 : vector<32x128xf32>
    %14 = arith.addf %8, %13 : vector<32x128xf32>
    %15 = vector.extract_strided_slice %0 {offsets = [0, 2], sizes = [32, 1], strides = [1, 1]} : vector<32x4xf32> to vector<32x1xf32>
    %16 = vector.extract_strided_slice %1 {offsets = [2, 0], sizes = [1, 128], strides = [1, 1]} : vector<4x128xf32> to vector<1x128xf32>
    %17 = vector.broadcast %15 : vector<32x1xf32> to vector<32x128xf32>
    %18 = vector.broadcast %16 : vector<1x128xf32> to vector<32x128xf32>
    %19 = arith.mulf %17, %18 : vector<32x128xf32>
    %20 = arith.addf %14, %19 : vector<32x128xf32>
    %21 = vector.extract_strided_slice %0 {offsets = [0, 3], sizes = [32, 1], strides = [1, 1]} : vector<32x4xf32> to vector<32x1xf32>
    %22 = vector.extract_strided_slice %1 {offsets = [3, 0], sizes = [1, 128], strides = [1, 1]} : vector<4x128xf32> to vector<1x128xf32>
    %23 = vector.broadcast %21 : vector<32x1xf32> to vector<32x128xf32>
    %24 = vector.broadcast %22 : vector<1x128xf32> to vector<32x128xf32>
    %25 = arith.mulf %23, %24 : vector<32x128xf32>
    %26 = arith.addf %20, %25 : vector<32x128xf32>
    %c0_5 = arith.constant 0 : index
    %c0_6 = arith.constant 0 : index
    %27 = vector.load %arg9[%c0_5, %c0_6] : memref<32x128xf32, #tpu.memory_space<vmem>>, vector<32x128xf32>
    tpu.vector_store %arg9[%c0_5, %c0_6], %26 {strides = array<i32>} : memref<32x128xf32, #tpu.memory_space<vmem>>, vector<32x128xf32>,
    %c0_7 = arith.constant 0 : index
    %c0_8 = arith.constant 0 : index
    %28 = vector.load %arg4[%c0_7, %c0_8] : memref<2x128xf32, #tpu.memory_space<vmem>>, vector<2x128xf32>
    %c0_9 = arith.constant 0 : index
    %c0_10 = arith.constant 0 : index
    %29 = vector.load %arg5[%c0_9, %c0_10] : memref<128x512xf32, #tpu.memory_space<vmem>>, vector<128x512xf32>
    %cst = arith.constant dense<0.000000e+00> : vector<2x512xf32>
    %30 = tpu.matmul %28, %29, %cst {dimension_numbers = #tpu.dot_dimension_numbers<[1], [0], [0], [1], [0, 0, 1, 1], [], []>} : vector<2x128xf32>, vector<128x512xf32>, vector<2x512xf32> -> vector<2x512xf32>
    %c0_11 = arith.constant 0 : index
    %c0_12 = arith.constant 0 : index
    %31 = vector.load %arg6[%c0_11, %c0_12] : memref<1x512xf32, #tpu.memory_space<vmem>>, vector<1x512xf32>
    %32 = vector.broadcast %31 : vector<1x512xf32> to vector<2x512xf32>
    %33 = arith.addf %30, %32 : vector<2x512xf32>
    %cst_13 = arith.constant 5.000000e-01 : f32
    %34 = vector.broadcast %cst_13 : f32 to vector<2x512xf32>
    %35 = arith.mulf %34, %33 : vector<2x512xf32>
    %cst_14 = arith.constant 0.707106769 : f32
    %36 = vector.broadcast %cst_14 : f32 to vector<2x512xf32>
    %37 = arith.mulf %33, %36 : vector<2x512xf32>
    %38 = math.erf %37 : vector<2x512xf32>
    %cst_15 = arith.constant 1.000000e+00 : f32
    %39 = vector.broadcast %cst_15 : f32 to vector<2x512xf32>
    %40 = arith.addf %39, %38 : vector<2x512xf32>
    %41 = arith.mulf %35, %40 : vector<2x512xf32>
    %c0_16 = arith.constant 0 : index
    %c0_17 = arith.constant 0 : index
    %42 = vector.load %arg7[%c0_16, %c0_17] : memref<512x128xf32, #tpu.memory_space<vmem>>, vector<512x128xf32>
    %cst_18 = arith.constant dense<0.000000e+00> : vector<2x128xf32>
    %43 = tpu.matmul %41, %42, %cst_18 {dimension_numbers = #tpu.dot_dimension_numbers<[1], [0], [0], [1], [0, 0, 1, 1], [], []>} : vector<2x512xf32>, vector<512x128xf32>, vector<2x128xf32> -> vector<2x128xf32>
    %c0_19 = arith.constant 0 : index
    %c0_20 = arith.constant 0 : index
    %44 = vector.load %arg8[%c0_19, %c0_20] : memref<2x128xf32, #tpu.memory_space<vmem>>, vector<2x128xf32>
    %45 = arith.addf %43, %44 : vector<2x128xf32>
    %c0_21 = arith.constant 0 : index
    %c0_22 = arith.constant 0 : index
    %46 = vector.load %arg10[%c0_21, %c0_22] : memref<2x128xf32, #tpu.memory_space<vmem>>, vector<2x128xf32>
    tpu.vector_store %arg10[%c0_21, %c0_22], %45 {strides = array<i32>} : memref<2x128xf32, #tpu.memory_space<vmem>>, vector<2x128xf32>,
    return
  }
  func.func @transform_0(%arg0: i32) -> (i32, i32) {
    %c0_i32 = arith.constant 0 : i32
    %c0_i32_0 = arith.constant 0 : i32
    %c0_i32_1 = arith.constant 0 : i32
    return %c0_i32, %c0_i32_0 : i32, i32
  }
  func.func @transform_1(%arg0: i32) -> (i32, i32) {
    %c0_i32 = arith.constant 0 : i32
    %c0_i32_0 = arith.constant 0 : i32
    %c0_i32_1 = arith.constant 0 : i32
    return %c0_i32, %c0_i32_0 : i32, i32
  }
  func.func @transform_2(%arg0: i32) -> (i32, i32) {
    %c0_i32 = arith.constant 0 : i32
    %c0_i32_0 = arith.constant 0 : i32
    %c0_i32_1 = arith.constant 0 : i32
    return %c0_i32, %c0_i32_0 : i32, i32
  }
  func.func @transform_3(%arg0: i32) -> (i32, i32) {
    %c0_i32 = arith.constant 0 : i32
    %c0_i32_0 = arith.constant 0 : i32
    %c0_i32_1 = arith.constant 0 : i32
    return %c0_i32, %c0_i32_0 : i32, i32
  }
  func.func @transform_4(%arg0: i32) -> (i32, i32) {
    %c0_i32 = arith.constant 0 : i32
    %c0_i32_0 = arith.constant 0 : i32
    %c0_i32_1 = arith.constant 0 : i32
    return %c0_i32, %c0_i32_0 : i32, i32
  }
  func.func @transform_5(%arg0: i32) -> (i32, i32) {
    %c0_i32 = arith.constant 0 : i32
    %c0_i32_0 = arith.constant 0 : i32
    %c0_i32_1 = arith.constant 0 : i32
    return %c0_i32, %c0_i32_0 : i32, i32
  }
  func.func @transform_6(%arg0: i32) -> (i32, i32) {
    %c0_i32 = arith.constant 0 : i32
    %c0_i32_0 = arith.constant 0 : i32
    %c0_i32_1 = arith.constant 0 : i32
    return %c0_i32, %c0_i32_0 : i32, i32
  }
  func.func @transform_7(%arg0: i32) -> (i32, i32) {
    %c0_i32 = arith.constant 0 : i32
    %c0_i32_0 = arith.constant 0 : i32
    %c0_i32_1 = arith.constant 0 : i32
    return %c0_i32, %c0_i32_0 : i32, i32
  }
  func.func @transform_8(%arg0: i32) -> (i32, i32) {
    %c0_i32 = arith.constant 0 : i32
    %c0_i32_0 = arith.constant 0 : i32
    %c0_i32_1 = arith.constant 0 : i32
    return %c0_i32, %c0_i32_0 : i32, i32
  }
  func.func @transform_9(%arg0: i32) -> (i32, i32) {
    %c0_i32 = arith.constant 0 : i32
    %c0_i32_0 = arith.constant 0 : i32
    %c0_i32_1 = arith.constant 0 : i32
    return %c0_i32, %c0_i32_0 : i32, i32
  }
}

</mosaic_0001>

<bundles_post_ra>
// kernel: tpu_custom_call.1
= control target key start
LH: loop header
LB: loop body
LE: loop exit
PB: predicated region body
PF: predicated region fallthrough
CT: control target
= control target key end

     0   :  { %15 = vsyncpa [#allocation3], 0  ;;  %s1163_s0 = inlined_call_operand.vmem [shape: f32[32,4], index: 0, kind: input, shape index: {}]   ;;  %s1164_s1 = inlined_call_operand.vmem [shape: f32[4,128], index: 1, kind: input, shape index: {}]   ;;  %s1165_s2 = inlined_call_operand.vmem [shape: f32[32,128], index: 2, kind: input, shape index: {}]   ;;  %s1166_s3 = inlined_call_operand.vmem [shape: f32[2,128], index: 3, kind: input, shape index: {}]   ;;  %s1167_s4 = inlined_call_operand.hbm [shape: f32[128,512], index: 4, kind: input, shape index: {}]   ;;  %s1168_s5 = inlined_call_operand.vmem [shape: f32[1,512], index: 5, kind: input, shape index: {}]   ;;  %s1169_s6 = inlined_call_operand.hbm [shape: f32[512,128], index: 6, kind: input, shape index: {}]   ;;  %s1170_s7 = inlined_call_operand.vmem [shape: f32[2,128], index: 7, kind: input, shape index: {}]   ;;  %s1171_s8 = inlined_call_operand.hbm [shape: f32[32,128], index: 8, kind: output, shape index: {0}]   ;;  %s1172_s9 = inlined_call_operand.hbm [shape: f32[2,128], index: 9, kind: output, shape index: {1}]  }
   0x1   :  { %16 = vsyncpa [#allocation6], 0 }
   0x2   :  { %17 = vsyncpa [#allocation4], 0 }
   0x3   :  { %18 = vsyncpa [#allocation9], 0  ;;  %s1000_s30 = smov [#allocation2]   ;;  %s904_s13 = scalar_lea.hbm %s1167_s4, 8192 }
   0x4   :  { %s32_s10 = sshll.u32 %s1000_s30, 4  ;;  %p905_p0 = scmp.ne.s32.totalorder %s1167_s4, %s904_s13  ;;  %s33_s10 = int_to_ptr.vmem [resolvable:$true] %s32_s10 }
   0x5   :  { %p908_p1 = scmp.lt.u32.totalorder %s904_s13, %s1167_s4 }
   0x7   :  { %p910_p2 = pnand %p908_p1, %p905_p0 }
   0x9   :  { %913 = shalt.err (!%p910_p2)
}
   0xa   :  { %s914_s18 = scalar_lea.vmem %s33_s10, 8192  ;;  %p919_p4 = scmp.lt.s32.totalorder %s33_s10, %s33_s10 }
   0xb   :  { %p915_p3 = scmp.ne.s32.totalorder %s33_s10, %s914_s18  ;;  %p920_p5 = scmp.lt.s32.totalorder %s914_s18, %s914_s18 }
   0xd   :  { %p921_p6 = por %p920_p5, %p919_p4 }
   0xf   :  { %p922_p7 = pnand %p921_p6, %p915_p3 }
  0x11   :  { %925 = shalt.err (!%p922_p7)
}
  0x12   :  { %s1001_s19 = smov 512   ;;  %s1002_s20 = smov 32  }
  0x13   :  { %38 = dma.hbm_to_vmem [thread:$0]  %s1167_s4, 8192, %s33_s10, [#allocation3], %s1001_s19, %s1001_s19, %s1002_s20  }
  0x14   :  { %s1003_s23 = smov [#allocation5]   ;;  %s926_s27 = scalar_lea.hbm %s1169_s6, 8192 }
  0x15   :  { %s46_s24 = sshll.u32 %s1003_s23, 4  ;;  %p927_p8 = scmp.ne.s32.totalorder %s1169_s6, %s926_s27  ;;  %s47_s24 = int_to_ptr.vmem [resolvable:$true] %s46_s24 }
  0x16   :  { %p930_p9 = scmp.lt.u32.totalorder %s926_s27, %s1169_s6 }
  0x18   :  { %p932_p10 = pnand %p930_p9, %p927_p8 }
  0x1a   :  { %935 = shalt.err (!%p932_p10)
}
  0x1b   :  { %s936_s12 = scalar_lea.vmem %s47_s24, 8192  ;;  %p941_p12 = scmp.lt.s32.totalorder %s47_s24, %s47_s24 }
  0x1c   :  { %p937_p11 = scmp.ne.s32.totalorder %s47_s24, %s936_s12  ;;  %p942_p13 = scmp.lt.s32.totalorder %s936_s12, %s936_s12 }
  0x1e   :  { %p943_p0 = por %p942_p13, %p941_p12 }
  0x20   :  { %p944_p1 = pnand %p943_p0, %p937_p11 }
  0x22   :  { %947 = shalt.err (!%p944_p1)
}
  0x23   :  { %s1004_s4 = smov 128   ;;  %s1005_s10 = smov 8  }
  0x24   :  { %52 = dma.hbm_to_vmem [thread:$0]  %s1169_s6, 8192, %s47_s24, [#allocation6], %s1004_s4, %s1004_s4, %s1005_s10  }
  0x25   :  { %992 = dma.done.wait [#allocation3], 8192  }
  0x26   :  { %993 = vsyncadd [#allocation3], 4294959104 }
  0x27   :  { %994 = dma.done.wait [#allocation6], 8192  }
  0x28   :  { %995 = vsyncadd [#allocation6], 4294959104  ;;  %v1006_v0 = vmov 0.0   ;;  %v192_v1 = vld [vmem:[#allocation2 + $0x8] sm:$0xff]  ;;  %v194_v3 = vld [vmem:[#allocation2 + $0x18] sm:$0xff] }
  0x29   :  { %341 = vmatprep.mubr.f32.mxu0 %v1006_v0  ;;  %412 = vmatprep.mubr.f32.mxu1 %v1006_v0  ;;  %v196_v2 = vld [vmem:[#allocation2 + $0x28] sm:$0xff]  ;;  %v198_v5 = vld [vmem:[#allocation2 + $0x38] sm:$0xff]  ;;  %v191_v6 = vld [vmem:[#allocation2] sm:$0xff] }
  0x2a   :  { %v747_v4 = vpack.c.bf16 %v196_v2, %v192_v1  ;;  %v195_v7 = vld [vmem:[#allocation2 + $0x20] sm:$0xff]  ;;  %v779_v8 = vpack.c.bf16 %v198_v5, %v194_v3  ;;  %v193_v10 = vld [vmem:[#allocation2 + $0x10] sm:$0xff]  ;;  %v200_v12 = vld [vmem:[#allocation2 + $0x48] sm:$0xff] }
  0x2b   :  { %v749_v9 = vpack.c.bf16 %v195_v7, %v191_v6  ;;  %v197_v11 = vld [vmem:[#allocation2 + $0x30] sm:$0xff]  ;;  %v204_v14 = vld [vmem:[#allocation2 + $0x68] sm:$0xff]  ;;  %v202_v15 = vld [vmem:[#allocation2 + $0x58] sm:$0xff] }
  0x2c   :  { %748 = vmatprep.subr.bf16.mxu0 %v747_v4  ;;  %v781_v13 = vpack.c.bf16 %v197_v11, %v193_v10  ;;  %v206_v16 = vld [vmem:[#allocation2 + $0x78] sm:$0xff]  ;;  %780 = vmatprep.subr.bf16.mxu1 %v779_v8  ;;  %v751_v17 = vpack.c.bf16 %v204_v14, %v200_v12  ;;  %v199_v19 = vld [vmem:[#allocation2 + $0x40] sm:$0xff]  ;;  %v201_v21 = vld [vmem:[#allocation2 + $0x50] sm:$0xff] }
  0x2d   :  { %750 = vmatpush1.bf16.msra.mxu0 %v749_v9  ;;  %v783_v18 = vpack.c.bf16 %v206_v16, %v202_v15  ;;  %v203_v20 = vld [vmem:[#allocation2 + $0x60] sm:$0xff]  ;;  %v205_v23 = vld [vmem:[#allocation2 + $0x70] sm:$0xff]  ;;  %v208_v24 = vld [vmem:[#allocation2 + $0x88] sm:$0xff] }
  0x2e   :  { %782 = vmatpush1.bf16.msra.mxu1 %v781_v13  ;;  %v753_v22 = vpack.c.bf16 %v203_v20, %v199_v19  ;;  %v212_v25 = vld [vmem:[#allocation2 + $0xa8] sm:$0xff]  ;;  %752 = vmatprep.subr.bf16.mxu0 %v751_v17  ;;  %v785_v26 = vpack.c.bf16 %v205_v23, %v201_v21  ;;  %v210_v28 = vld [vmem:[#allocation2 + $0x98] sm:$0xff]  ;;  %v207_v30 = vld [vmem:[#allocation2 + $0x80] sm:$0xff] }
  0x2f   :  { %784 = vmatprep.subr.bf16.mxu1 %v783_v18  ;;  %v755_v27 = vpack.c.bf16 %v212_v25, %v208_v24  ;;  %v214_v29 = vld [vmem:[#allocation2 + $0xb8] sm:$0xff]  ;;  %v211_v32 = vld [vmem:[#allocation2 + $0xa0] sm:$0xff]  ;;  %v209_v33 = vld [vmem:[#allocation2 + $0x90] sm:$0xff] }
  0x30   :  { %v787_v31 = vpack.c.bf16 %v214_v29, %v210_v28  ;;  %v213_v34 = vld [vmem:[#allocation2 + $0xb0] sm:$0xff]  ;;  %v757_v35 = vpack.c.bf16 %v211_v32, %v207_v30  ;;  %v216_v36 = vld [vmem:[#allocation2 + $0xc8] sm:$0xff]  ;;  %v218_v38 = vld [vmem:[#allocation2 + $0xd8] sm:$0xff] }
  0x31   :  { %754 = vmatpush1.bf16.msra.mxu0 %v753_v22  ;;  %v220_v37 = vld [vmem:[#allocation2 + $0xe8] sm:$0xff]  ;;  %v789_v39 = vpack.c.bf16 %v213_v34, %v209_v33  ;;  %v222_v41 = vld [vmem:[#allocation2 + $0xf8] sm:$0xff]  ;;  %v215_v42 = vld [vmem:[#allocation2 + $0xc0] sm:$0xff] }
  0x32   :  { %786 = vmatpush1.bf16.msra.mxu1 %v785_v26  ;;  %756 = vmatprep.subr.bf16.mxu0 %v755_v27  ;;  %v759_v40 = vpack.c.bf16 %v220_v37, %v216_v36  ;;  %v219_v43 = vld [vmem:[#allocation2 + $0xe0] sm:$0xff]  ;;  %v791_v44 = vpack.c.bf16 %v222_v41, %v218_v38  ;;  %v217_v45 = vld [vmem:[#allocation2 + $0xd0] sm:$0xff]  ;;  %v224_v47 = vld [vmem:[#allocation2 + $0x108] sm:$0xff] }
  0x33   :  { %788 = vmatprep.subr.bf16.mxu1 %v787_v31  ;;  %v221_v46 = vld [vmem:[#allocation2 + $0xf0] sm:$0xff]  ;;  %v228_v48 = vld [vmem:[#allocation2 + $0x128] sm:$0xff]  ;;  %v226_v49 = vld [vmem:[#allocation2 + $0x118] sm:$0xff]  ;;  %v761_v51 = vpack.c.bf16 %v219_v43, %v215_v42 }
  0x34   :  { %v230_v50 = vld [vmem:[#allocation2 + $0x138] sm:$0xff]  ;;  %v793_v52 = vpack.c.bf16 %v221_v46, %v217_v45  ;;  %v763_v53 = vpack.c.bf16 %v228_v48, %v224_v47  ;;  %v223_v54 = vld [vmem:[#allocation2 + $0x100] sm:$0xff]  ;;  %v225_v56 = vld [vmem:[#allocation2 + $0x110] sm:$0xff] }
  0x35   :  { %758 = vmatpush1.bf16.msra.mxu0 %v757_v35  ;;  %v227_v55 = vld [vmem:[#allocation2 + $0x120] sm:$0xff]  ;;  %v795_v57 = vpack.c.bf16 %v230_v50, %v226_v49  ;;  %v229_v58 = vld [vmem:[#allocation2 + $0x130] sm:$0xff]  ;;  %v232_v59 = vld [vmem:[#allocation2 + $0x148] sm:$0xff] }
  0x36   :  { %790 = vmatpush1.bf16.msra.mxu1 %v789_v39  ;;  %760 = vmatprep.subr.bf16.mxu0 %v759_v40  ;;  %v236_v60 = vld [vmem:[#allocation2 + $0x168] sm:$0xff]  ;;  %v234_v61 = vld [vmem:[#allocation2 + $0x158] sm:$0xff]  ;;  %v765_v63 = vpack.c.bf16 %v227_v55, %v223_v54  ;;  %v797_v0 = vpack.c.bf16 %v229_v58, %v225_v56  ;;  %v231_v2 = vld [vmem:[#allocation2 + $0x140] sm:$0xff] }
  0x37   :  { %792 = vmatprep.subr.bf16.mxu1 %v791_v44  ;;  %v238_v62 = vld [vmem:[#allocation2 + $0x178] sm:$0xff]  ;;  %v767_v1 = vpack.c.bf16 %v236_v60, %v232_v59  ;;  %v235_v3 = vld [vmem:[#allocation2 + $0x160] sm:$0xff]  ;;  %v233_v4 = vld [vmem:[#allocation2 + $0x150] sm:$0xff] }
  0x38   :  { %v799_v5 = vpack.c.bf16 %v238_v62, %v234_v61  ;;  %v237_v6 = vld [vmem:[#allocation2 + $0x170] sm:$0xff]  ;;  %v240_v7 = vld [vmem:[#allocation2 + $0x188] sm:$0xff]  ;;  %v242_v9 = vld [vmem:[#allocation2 + $0x198] sm:$0xff]  ;;  %v769_v11 = vpack.c.bf16 %v235_v3, %v231_v2 }
  0x39   :  { %762 = vmatpush1.bf16.msra.mxu0 %v761_v51  ;;  %v244_v8 = vld [vmem:[#allocation2 + $0x1a8] sm:$0xff]  ;;  %v246_v10 = vld [vmem:[#allocation2 + $0x1b8] sm:$0xff]  ;;  %v801_v12 = vpack.c.bf16 %v237_v6, %v233_v4  ;;  %v239_v14 = vld [vmem:[#allocation2 + $0x180] sm:$0xff] }
  0x3a   :  { %794 = vmatpush1.bf16.msra.mxu1 %v793_v52  ;;  %764 = vmatprep.subr.bf16.mxu0 %v763_v53  ;;  %v771_v13 = vpack.c.bf16 %v244_v8, %v240_v7  ;;  %v243_v15 = vld [vmem:[#allocation2 + $0x1a0] sm:$0xff]  ;;  %v241_v16 = vld [vmem:[#allocation2 + $0x190] sm:$0xff]  ;;  %v803_v17 = vpack.c.bf16 %v246_v10, %v242_v9  ;;  %v248_v19 = vld [vmem:[#allocation2 + $0x1c8] sm:$0xff] }
  0x3b   :  { %796 = vmatprep.subr.bf16.mxu1 %v795_v57  ;;  %v245_v18 = vld [vmem:[#allocation2 + $0x1b0] sm:$0xff]  ;;  %v252_v20 = vld [vmem:[#allocation2 + $0x1e8] sm:$0xff]  ;;  %v250_v21 = vld [vmem:[#allocation2 + $0x1d8] sm:$0xff]  ;;  %v773_v23 = vpack.c.bf16 %v243_v15, %v239_v14 }
  0x3c   :  { %v254_v22 = vld [vmem:[#allocation2 + $0x1f8] sm:$0xff]  ;;  %v805_v24 = vpack.c.bf16 %v245_v18, %v241_v16  ;;  %v775_v25 = vpack.c.bf16 %v252_v20, %v248_v19  ;;  %v247_v26 = vld [vmem:[#allocation2 + $0x1c0] sm:$0xff]  ;;  %v249_v28 = vld [vmem:[#allocation2 + $0x1d0] sm:$0xff] }
  0x3d   :  { %766 = vmatpush1.bf16.msra.mxu0 %v765_v63  ;;  %v251_v27 = vld [vmem:[#allocation2 + $0x1e0] sm:$0xff]  ;;  %v807_v29 = vpack.c.bf16 %v254_v22, %v250_v21  ;;  %v253_v30 = vld [vmem:[#allocation2 + $0x1f0] sm:$0xff]  ;;  %v456_v32 = vld [vmem:[#allocation5 + $0x88] sm:$0xff] }
  0x3e   :  { %798 = vmatpush1.bf16.msra.mxu1 %v797_v0  ;;  %768 = vmatprep.subr.bf16.mxu0 %v767_v1  ;;  %v455_v31 = vld [vmem:[#allocation5 + $0x80] sm:$0xff]  ;;  %v488_v34 = vld [vmem:[#allocation5 + $0x188] sm:$0xff]  ;;  %v777_v35 = vpack.c.bf16 %v251_v27, %v247_v26  ;;  %v809_v36 = vpack.c.bf16 %v253_v30, %v249_v28  ;;  %v457_v43 = vld [vmem:[#allocation5 + $0x90] sm:$0xff] }
  0x3f   :  { %800 = vmatprep.subr.bf16.mxu1 %v799_v5  ;;  %v487_v33 = vld [vmem:[#allocation5 + $0x180] sm:$0xff]  ;;  %v811_v37 = vpack.c.bf16 %v456_v32, %v455_v31  ;;  %v440_v39 = vld [vmem:[#allocation5 + $0x8] sm:$0xff]  ;;  %v458_v44 = vld [vmem:[#allocation5 + $0x98] sm:$0xff] }
  0x40   :  { %v439_v38 = vld [vmem:[#allocation5] sm:$0xff]  ;;  %v843_v41 = vpack.c.bf16 %v488_v34, %v487_v33  ;;  %v472_v42 = vld [vmem:[#allocation5 + $0x108] sm:$0xff]  ;;  %v489_v45 = vld [vmem:[#allocation5 + $0x190] sm:$0xff]  ;;  %v815_v50 = vpack.c.bf16 %v458_v44, %v457_v43 }
  0x41   :  { %770 = vmatpush1.bf16.msra.mxu0 %v769_v11  ;;  %v471_v40 = vld [vmem:[#allocation5 + $0x100] sm:$0xff]  ;;  %v490_v46 = vld [vmem:[#allocation5 + $0x198] sm:$0xff]  ;;  %v813_v48 = vpack.c.bf16 %v440_v39, %v439_v38  ;;  %v441_v51 = vld [vmem:[#allocation5 + $0x10] sm:$0xff] }
  0x42   :  { %802 = vmatpush1.bf16.msra.mxu1 %v801_v12  ;;  %772 = vmatprep.subr.bf16.mxu0 %v771_v13  ;;  %v190_v47 = vld [vmem:[%s1166_s3] sm:$0x3]  ;;  %v845_v49 = vpack.c.bf16 %v472_v42, %v471_v40  ;;  %v442_v52 = vld [vmem:[#allocation5 + $0x18] sm:$0xff]  ;;  %v473_v53 = vld [vmem:[#allocation5 + $0x110] sm:$0xff]  ;;  %v847_v54 = vpack.c.bf16 %v490_v46, %v489_v45 }
  0x43   :  { %804 = vmatprep.subr.bf16.mxu1 %v803_v17  ;;  %v474_v55 = vld [vmem:[#allocation5 + $0x118] sm:$0xff]  ;;  %v459_v56 = vld [vmem:[#allocation5 + $0xa0] sm:$0xff]  ;;  %v460_v57 = vld [vmem:[#allocation5 + $0xa8] sm:$0xff]  ;;  %v817_v60 = vpack.c.bf16 %v442_v52, %v441_v51 }
  0x44   :  { %v491_v58 = vld [vmem:[#allocation5 + $0x1a0] sm:$0xff]  ;;  %v492_v59 = vld [vmem:[#allocation5 + $0x1a8] sm:$0xff]  ;;  %v849_v61 = vpack.c.bf16 %v474_v55, %v473_v53  ;;  %v819_v62 = vpack.c.bf16 %v460_v57, %v459_v56  ;;  %v461_v6 = vld [vmem:[#allocation5 + $0xb0] sm:$0xff] }
  0x45   :  { %774 = vmatpush1.bf16.msra.mxu0 %v773_v23  ;;  %v443_v63 = vld [vmem:[#allocation5 + $0x20] sm:$0xff]  ;;  %v444_v0 = vld [vmem:[#allocation5 + $0x28] sm:$0xff]  ;;  %v851_v1 = vpack.c.bf16 %v492_v59, %v491_v58  ;;  %v462_v7 = vld [vmem:[#allocation5 + $0xb8] sm:$0xff] }
  0x46   :  { %806 = vmatpush1.bf16.msra.mxu1 %v805_v24  ;;  %776 = vmatprep.subr.bf16.mxu0 %v775_v25  ;;  %v475_v2 = vld [vmem:[#allocation5 + $0x120] sm:$0xff]  ;;  %v476_v3 = vld [vmem:[#allocation5 + $0x128] sm:$0xff]  ;;  %v821_v4 = vpack.c.bf16 %v444_v0, %v443_v63  ;;  %v493_v8 = vld [vmem:[#allocation5 + $0x1b0] sm:$0xff]  ;;  %v823_v9 = vpack.c.bf16 %v462_v7, %v461_v6  ;;  %v1008_v7 = vmov 1  }
  0x47   :  { %808 = vmatprep.subr.bf16.mxu1 %v807_v29  ;;  %v853_v5 = vpack.c.bf16 %v476_v3, %v475_v2  ;;  %v494_v10 = vld [vmem:[#allocation5 + $0x1b8] sm:$0xff]  ;;  %v445_v11 = vld [vmem:[#allocation5 + $0x30] sm:$0xff]  ;;  %v463_v18 = vld [vmem:[#allocation5 + $0xc0] sm:$0xff] }
  0x48   :  { %v446_v12 = vld [vmem:[#allocation5 + $0x38] sm:$0xff]  ;;  %v855_v13 = vpack.c.bf16 %v494_v10, %v493_v8  ;;  %v477_v15 = vld [vmem:[#allocation5 + $0x130] sm:$0xff]  ;;  %v464_v19 = vld [vmem:[#allocation5 + $0xc8] sm:$0xff]  ;;  %v1009_v8 = vmov 2   ;;  %v90_v10 = vlaneseq }
  0x49   :  { %778 = vmatpush1.bf16.msra.mxu0 %v777_v35  ;;  %v825_v14 = vpack.c.bf16 %v446_v12, %v445_v11  ;;  %v478_v16 = vld [vmem:[#allocation5 + $0x138] sm:$0xff]  ;;  %v495_v20 = vld [vmem:[#allocation5 + $0x1c0] sm:$0xff]  ;;  %v827_v21 = vpack.c.bf16 %v464_v19, %v463_v18  ;;  %v496_v22 = vld [vmem:[#allocation5 + $0x1c8] sm:$0xff] }
  0x4a   :  { %810 = vmatpush1.bf16.msra.mxu1 %v809_v36  ;;  %812 = vmatprep.subr.bf16.mxu0 %v811_v37  ;;  %v857_v17 = vpack.c.bf16 %v478_v16, %v477_v15  ;;  %v447_v23 = vld [vmem:[#allocation5 + $0x40] sm:$0xff]  ;;  %v448_v24 = vld [vmem:[#allocation5 + $0x48] sm:$0xff]  ;;  %v859_v25 = vpack.c.bf16 %v496_v22, %v495_v20  ;;  %v465_v30 = vld [vmem:[#allocation5 + $0xd0] sm:$0xff]  ;;  %v1105_v11 = vshrl.u32 %v90_v10, 7 }
  0x4b   :  { %844 = vmatprep.subr.bf16.mxu1 %v843_v41  ;;  %v829_v26 = vpack.c.bf16 %v448_v24, %v447_v23  ;;  %v479_v27 = vld [vmem:[#allocation5 + $0x140] sm:$0xff]  ;;  %v480_v28 = vld [vmem:[#allocation5 + $0x148] sm:$0xff]  ;;  %v466_v31 = vld [vmem:[#allocation5 + $0xd8] sm:$0xff] }
  0x4c   :  { %342 = vmatmul.mubr.f32.vlgmr.msra.gmra.mrb[0].mxu0 %v190_v47  ;;  %v861_v29 = vpack.c.bf16 %v480_v28, %v479_v27  ;;  %v497_v32 = vld [vmem:[#allocation5 + $0x1d0] sm:$0xff]  ;;  %v831_v33 = vpack.c.bf16 %v466_v31, %v465_v30  ;;  %v498_v34 = vld [vmem:[#allocation5 + $0x1d8] sm:$0xff]  ;;  %v467_v42 = vld [vmem:[#allocation5 + $0xe0] sm:$0xff]  ;;  %v92_v12 = vsub.s32 0, %v1105_v11  ;;  %v120_v15 = vsub.s32 1, %v1105_v11 }
  0x4d   :  { %413 = vmatmul.mubr.f32.vlgmr.msra.gmra.mrb[0].mxu1 %v190_v47  ;;  %814 = vmatpush3.bf16.msra.mxu0 %v813_v48  ;;  %v449_v35 = vld [vmem:[#allocation5 + $0x50] sm:$0xff]  ;;  %v450_v36 = vld [vmem:[#allocation5 + $0x58] sm:$0xff]  ;;  %v863_v37 = vpack.c.bf16 %v498_v34, %v497_v32  ;;  %v468_v43 = vld [vmem:[#allocation5 + $0xe8] sm:$0xff]  ;;  %v176_v16 = vsub.s32 3, %v1105_v11 }
  0x4e   :  { %846 = vmatpush3.bf16.msra.mxu1 %v845_v49  ;;  %816 = vmatprep.subr.bf16.mxu0 %v815_v50  ;;  %v833_v38 = vpack.c.bf16 %v450_v36, %v449_v35  ;;  %v481_v39 = vld [vmem:[#allocation5 + $0x150] sm:$0xff]  ;;  %v482_v40 = vld [vmem:[#allocation5 + $0x158] sm:$0xff]  ;;  %v499_v44 = vld [vmem:[#allocation5 + $0x1e0] sm:$0xff]  ;;  %v835_v45 = vpack.c.bf16 %v468_v43, %v467_v42 }
  0x4f   :  { %848 = vmatprep.subr.bf16.mxu1 %v847_v54  ;;  %v865_v41 = vpack.c.bf16 %v482_v40, %v481_v39  ;;  %v500_v46 = vld [vmem:[#allocation5 + $0x1e8] sm:$0xff]  ;;  %v451_v47 = vld [vmem:[#allocation5 + $0x60] sm:$0xff]  ;;  %v469_v54 = vld [vmem:[#allocation5 + $0xf0] sm:$0xff] }
  0x50   :  { %v452_v48 = vld [vmem:[#allocation5 + $0x68] sm:$0xff]  ;;  %v867_v49 = vpack.c.bf16 %v500_v46, %v499_v44  ;;  %v483_v51 = vld [vmem:[#allocation5 + $0x160] sm:$0xff]  ;;  %v470_v55 = vld [vmem:[#allocation5 + $0xf8] sm:$0xff] }
  0x51   :  { %818 = vmatpush3.bf16.msra.mxu0 %v817_v60  ;;  %v837_v50 = vpack.c.bf16 %v452_v48, %v451_v47  ;;  %v484_v52 = vld [vmem:[#allocation5 + $0x168] sm:$0xff]  ;;  %v501_v56 = vld [vmem:[#allocation5 + $0x1f0] sm:$0xff]  ;;  %v839_v57 = vpack.c.bf16 %v470_v55, %v469_v54  ;;  %v502_v58 = vld [vmem:[#allocation5 + $0x1f8] sm:$0xff] }
  0x52   :  { %850 = vmatpush3.bf16.msra.mxu1 %v849_v61  ;;  %820 = vmatprep.subr.bf16.mxu0 %v819_v62  ;;  %v869_v53 = vpack.c.bf16 %v484_v52, %v483_v51  ;;  %v453_v59 = vld [vmem:[#allocation5 + $0x70] sm:$0xff]  ;;  %v454_v60 = vld [vmem:[#allocation5 + $0x78] sm:$0xff]  ;;  %v871_v61 = vpack.c.bf16 %v502_v58, %v501_v56  ;;  %v61_v3 = vld [vmem:[%s1163_s0] sm:$0xff] }
  0x53   :  { %852 = vmatprep.subr.bf16.mxu1 %v851_v1  ;;  %v841_v62 = vpack.c.bf16 %v454_v60, %v453_v59  ;;  %v485_v63 = vld [vmem:[#allocation5 + $0x170] sm:$0xff]  ;;  %v486_v0 = vld [vmem:[#allocation5 + $0x178] sm:$0xff]  ;;  %v62_v6 = vld [vmem:[%s1163_s0 + $0x8] sm:$0xff] }
  0x54   :  { %v873_v1 = vpack.c.bf16 %v486_v0, %v485_v63  ;;  %v63_v2 = vld [vmem:[%s1163_s0 + $0x10] sm:$0xff]  ;;  %v66_v58 = vld [vmem:[%s1165_s2] sm:$0xff] }
  0x55   :  { %822 = vmatpush3.bf16.msra.mxu0 %v821_v4  ;;  %v1007_v4 = vmov 0  }
  0x56   :  { %854 = vmatpush3.bf16.msra.mxu1 %v853_v5  ;;  %824 = vmatprep.subr.bf16.mxu0 %v823_v9  ;;  %v64_v5 = vld [vmem:[%s1163_s0 + $0x18] sm:$0xff]  ;;  %v1010_v9 = vmov 3  }
  0x57   :  { %856 = vmatprep.subr.bf16.mxu1 %v855_v13  ;;  %889 = vset.pattern.permute.xlu1 %v1007_v4  ;;  %v255_v13 = vld [vmem:[%s1168_s5] sm:$0xf] }
  0x58   :  { %888 = vset.pattern.permute.xlu0 %v1007_v4  ;;  %82 = vperm.xlu1 %889, %v63_v2   ;;  %v264_v19 = vrot.slane %v255_v13, %v120_v15  ;;  %v272_v20 = vrot.slane %v255_v13, %v176_v16 }
  0x59   :  { %826 = vmatpush3.bf16.msra.mxu0 %v825_v14  ;;  %72 = vperm.xlu0 %888, %v61_v3   ;;  %v148_v14 = vsub.s32 2, %v1105_v11 }
  0x5a   :  { %858 = vmatpush3.bf16.msra.mxu1 %v857_v17  ;;  %828 = vmatprep.subr.bf16.mxu0 %v827_v21  ;;  %v260_v17 = vrot.slane %v255_v13, %v92_v12 }
  0x5b   :  { %860 = vmatprep.subr.bf16.mxu1 %v859_v25  ;;  %v268_v18 = vrot.slane %v255_v13, %v148_v14 }
  0x5c   :  { %87 = vperm.xlu1 %889, %v64_v5  }
  0x5d   :  { %830 = vmatpush3.bf16.msra.mxu0 %v829_v26  ;;  %77 = vperm.xlu0 %888, %v62_v6  }
  0x5e   :  { %862 = vmatpush3.bf16.msra.mxu1 %v861_v29  ;;  %832 = vmatprep.subr.bf16.mxu0 %v831_v33 }
  0x5f   :  { %864 = vmatprep.subr.bf16.mxu1 %v863_v37 }
  0x60   :  { %891 = vset.pattern.permute.xlu1 %v1008_v7 }
  0x61   :  { %834 = vmatpush3.bf16.msra.mxu0 %v833_v38  ;;  %890 = vset.pattern.permute.xlu0 %v1008_v7  ;;  %v67_v7 = vld [vmem:[%s1165_s2 + $0x8] sm:$0xff] }
  0x62   :  { %866 = vmatpush3.bf16.msra.mxu1 %v865_v41  ;;  %836 = vmatprep.subr.bf16.mxu0 %v835_v45 }
  0x63   :  { %868 = vmatprep.subr.bf16.mxu1 %v867_v49  ;;  %107 = vperm.xlu1 %891, %v62_v6  }
  0x64   :  { %103 = vperm.xlu0 %890, %v61_v3  }
  0x65   :  { %838 = vmatpush3.bf16.msra.mxu0 %v837_v50 }
  0x66   :  { %870 = vmatpush3.bf16.msra.mxu1 %v869_v53  ;;  %840 = vmatprep.subr.bf16.mxu0 %v839_v57  ;;  %v65_v53 = vld [vmem:[%s1164_s1] sm:$0xf] }
  0x67   :  { %872 = vmatprep.subr.bf16.mxu1 %v871_v61  ;;  %111 = vperm.xlu1 %891, %v63_v2   ;;  %v93_v54 = vrot.slane %v65_v53, %v92_v12  ;;  %v121_v59 = vrot.slane %v65_v53, %v120_v15  ;;  %v149_v0 = vrot.slane %v65_v53, %v148_v14  ;;  %v68_v14 = vld [vmem:[%s1165_s2 + $0x10] sm:$0xff] }
  0x68   :  { %115 = vperm.xlu0 %890, %v64_v5   ;;  %v177_v13 = vrot.slane %v65_v53, %v176_v16 }
  0x69   :  { %842 = vmatpush3.bf16.msra.mxu0 %v841_v62 }
  0x6a   :  { %874 = vmatpush3.bf16.msra.mxu1 %v873_v1 }
  0x6b   :  { %892 = vset.pattern.permute.xlu1 %v1009_v8 }
  0x6c   :  { %893 = vset.pattern.permute.xlu0 %v1009_v8  ;;  %131 = vperm.xlu1 %892, %v61_v3  }
  0x6d   :  { %135 = vperm.xlu0 %893, %v62_v6  }
  0x70   :  { %139 = vperm.xlu1 %892, %v63_v2  }
  0x71   :  { %894 = vset.pattern.permute.xlu0 %v1010_v9 }
  0x72   :  { %159 = vperm.xlu0 %894, %v61_v3  }
  0x74   :  { %143 = vperm.xlu1 %892, %v64_v5  }
  0x76   :  { %171 = vperm.xlu0 %894, %v64_v5  }
  0x78   :  { %895 = vset.pattern.permute.xlu1 %v1010_v9 }
  0x79   :  { %163 = vperm.xlu1 %895, %v62_v6  }
  0x7d   :  { %167 = vperm.xlu1 %895, %v63_v2   ;;  %v69_v2 = vld [vmem:[%s1165_s2 + $0x18] sm:$0xff]  ;;  %s1011_s2 = smov [#allocation7]  }
  0x7e   :  { %s650_s12 = sshll.u32 %s1011_s2, 4  ;;  %s651_s12 = int_to_ptr.vmem [resolvable:$true] %s650_s12 }
  0x7f   :  { %s948_s13 = scalar_lea.vmem %s651_s12, 512  ;;  %p953_p3 = scmp.lt.s32.totalorder %s651_s12, %s651_s12 }
  0x80   :  { %p949_p2 = scmp.ne.s32.totalorder %s651_s12, %s948_s13  ;;  %p954_p4 = scmp.lt.s32.totalorder %s948_s13, %s948_s13 }
  0x82   :  { %p955_p5 = por %p954_p4, %p953_p3 }
  0x84   :  { %p956_p6 = pnand %p955_p5, %p949_p2 }
  0xd7   :  { %v83_v49 = vpop.permute.xlu1 %82 }
  0xd8   :  { %v73_v50 = vpop.permute.xlu0 %72  ;;  %v96_v9 = vmul.f32 %v93_v54, %v83_v49 }
  0xd9   :  { %v94_v57 = vmul.f32 %v93_v54, %v73_v50 }
  0xdb   :  { %v88_v51 = vpop.permute.xlu1 %87  ;;  %v98_v62 = vadd.f32 %v94_v57, %v66_v58 }
  0xdc   :  { %v78_v52 = vpop.permute.xlu0 %77  ;;  %v97_v1 = vmul.f32 %v93_v54, %v88_v51 }
  0xdd   :  { %v95_v3 = vmul.f32 %v93_v54, %v78_v52 }
  0xde   :  { %v101_v10 = vadd.f32 %v97_v1, %v69_v2 }
  0xe2   :  { %v108_v55 = vpop.permute.xlu1 %107 }
  0xe3   :  { %v104_v56 = vpop.permute.xlu0 %103  ;;  %v123_v15 = vmul.f32 %v121_v59, %v108_v55 }
  0xe4   :  { %v122_v63 = vmul.f32 %v121_v59, %v104_v56 }
  0xe6   :  { %v112_v60 = vpop.permute.xlu1 %111  ;;  %v126_v5 = vadd.f32 %v122_v63, %v98_v62 }
  0xe7   :  { %v116_v61 = vpop.permute.xlu0 %115 }
  0xe8   :  { %v125_v12 = vmul.f32 %v121_v59, %v116_v61 }
  0xeb   :  { %v132_v4 = vpop.permute.xlu1 %131 }
  0xec   :  { %v136_v6 = vpop.permute.xlu0 %135  ;;  %v150_v8 = vmul.f32 %v149_v0, %v132_v4 }
 0x11f   :  { %v343_v21 = vpop.f32.mrb[0].mxu0 }
 0x120   :  { %v344_v22 = vadd.f32 %v343_v21, %v260_v17  ;;  %v414_v23 = vpop.f32.mrb[0].mxu1  ;;  %v345_v24 = vpop.f32.mrb[1].mxu0  ;;  %v99_v17 = vadd.f32 %v95_v3, %v67_v7 }
 0x121   :  { %v415_v25 = vadd.f32 %v414_v23, %v268_v18  ;;  %v346_v26 = vadd.f32 %v345_v24, %v264_v19  ;;  %v416_v27 = vpop.f32.mrb[1].mxu1  ;;  %v140_v18 = vpop.permute.xlu1 %139  ;;  %v154_v19 = vadd.f32 %v150_v8, %v126_v5  ;;  %v129_v23 = vadd.f32 %v125_v12, %v101_v10 }
 0x122   :  { %v423_v28 = vmul.f32 0.70710677, %v344_v22  ;;  %v417_v29 = vadd.f32 %v416_v27, %v272_v20  ;;  %v419_v41 = vmul.f32 0.5, %v344_v22  ;;  %v160_v20 = vpop.permute.xlu0 %159  ;;  %v100_v22 = vadd.f32 %v96_v9, %v68_v14 }
 0x123   :  { %v425_v30 = vmul.f32 0.70710677, %v415_v25  ;;  %v424_v31 = vmul.f32 0.70710677, %v346_v26  ;;  %v420_v39 = vmul.f32 0.5, %v346_v26  ;;  %v421_v44 = vmul.f32 0.5, %v415_v25 }
 0x124   :  { %896 = verf.f32 %v423_v28  ;;  %v426_v32 = vmul.f32 0.70710677, %v417_v29  ;;  %v422_v42 = vmul.f32 0.5, %v417_v29  ;;  %v178_v21 = vmul.f32 %v177_v13, %v160_v20 }
 0x125   :  { %898 = verf.f32 %v425_v30  ;;  %v124_v24 = vmul.f32 %v121_v59, %v112_v60  ;;  %v144_v25 = vpop.permute.xlu1 %143  ;;  %v127_v26 = vadd.f32 %v123_v15, %v99_v17  ;;  %v151_v27 = vmul.f32 %v149_v0, %v136_v6 }
 0x126   :  { %900 = verf.f32 %v424_v31  ;;  %v182_v28 = vadd.f32 %v178_v21, %v154_v19  ;;  %v153_v29 = vmul.f32 %v149_v0, %v144_v25  ;;  %v172_v11 = vpop.permute.xlu0 %171 }
 0x127   :  { %902 = verf.f32 %v426_v32  ;;  %v181_v16 = vmul.f32 %v177_v13, %v172_v11  ;;  %v128_v31 = vadd.f32 %v124_v24, %v100_v22  ;;  %v152_v32 = vmul.f32 %v149_v0, %v140_v18 }
 0x128   :  { %186 = vst [vmem:[#allocation7] sm:$0xff] %v182_v28  ;;  %v157_v30 = vadd.f32 %v153_v29, %v129_v23 }
 0x12e   :  { %v897_v33 = vpop.eup %896 }
 0x12f   :  { %v899_v34 = vpop.eup %898  ;;  %v431_v36 = vadd.f32 1.0, %v897_v33  ;;  %v155_v33 = vadd.f32 %v151_v27, %v127_v26 }
 0x130   :  { %v901_v35 = vpop.eup %900  ;;  %v433_v38 = vadd.f32 1.0, %v899_v34  ;;  %v164_v34 = vpop.permute.xlu1 %163 }
 0x131   :  { %v903_v37 = vpop.eup %902  ;;  %v432_v40 = vadd.f32 1.0, %v901_v35  ;;  %v435_v46 = vmul.f32 %v431_v36, %v419_v41  ;;  %v185_v35 = vadd.f32 %v181_v16, %v157_v30  ;;  %v179_v36 = vmul.f32 %v177_v13, %v164_v34 }
 0x132   :  { %v434_v43 = vadd.f32 1.0, %v903_v37  ;;  %v437_v48 = vmul.f32 %v433_v38, %v421_v44  ;;  %v156_v37 = vadd.f32 %v152_v32, %v128_v31 }
 0x133   :  { %v436_v45 = vmul.f32 %v432_v40, %v420_v39  ;;  %189 = vst [vmem:[#allocation7 + $0x18] sm:$0xff] %v185_v35  ;;  %v183_v38 = vadd.f32 %v179_v36, %v155_v33 }
 0x134   :  { %v438_v47 = vmul.f32 %v434_v43, %v422_v42  ;;  %v168_v39 = vpop.permute.xlu1 %167 }
 0x135   :  { %568 = vmatprep.mubr.f32.mxu0 %v436_v45  ;;  %187 = vst [vmem:[#allocation7 + $0x8] sm:$0xff] %v183_v38  ;;  %v180_v40 = vmul.f32 %v177_v13, %v168_v39 }
 0x136   :  { %638 = vmatprep.mubr.f32.mxu1 %v438_v47  ;;  %569 = vmatmul.mubr.f32.vlgmr.msra.gmra.mrb[2].mxu0 %v435_v46 }
 0x137   :  { %639 = vmatmul.mubr.f32.vlgmr.msra.gmra.mrb[2].mxu1 %v437_v48  ;;  %v184_v41 = vadd.f32 %v180_v40, %v156_v37 }
 0x139   :  { %188 = vst [vmem:[#allocation7 + $0x10] sm:$0xff] %v184_v41 }
 0x13a   :  { %959 = shalt.err (!%p956_p6)
}
 0x13b   :  { %s960_s15 = scalar_lea.hbm %s1171_s8, 512 }
 0x13c   :  { %p961_p7 = scmp.ne.s32.totalorder %s1171_s8, %s960_s15  ;;  %p964_p8 = scmp.lt.u32.totalorder %s960_s15, %s1171_s8 }
 0x13e   :  { %p966_p9 = pnand %p964_p8, %p961_p7 }
 0x140   :  { %969 = shalt.err (!%p966_p9)
}
 0x141   :  { %656 = dma.vmem_to_hbm [thread:$0]  %s651_s12, 512, %s1171_s8, [#allocation4], %s1004_s4, %s1004_s4, %s1005_s10  }
 0x142   :  { %v503_v44 = vld [vmem:[%s1170_s7] sm:$0x3]  ;;  %s1012_s0 = smov [#allocation8]  }
 0x143   :  { %s663_s23 = sshll.u32 %s1012_s0, 4  ;;  %s664_s23 = int_to_ptr.vmem [resolvable:$true] %s663_s23 }
 0x144   :  { %s970_s5 = scalar_lea.vmem %s664_s23, 32  ;;  %p975_p11 = scmp.lt.s32.totalorder %s664_s23, %s664_s23 }
 0x145   :  { %p971_p10 = scmp.ne.s32.totalorder %s664_s23, %s970_s5  ;;  %p976_p12 = scmp.lt.s32.totalorder %s970_s5, %s970_s5 }
 0x147   :  { %p977_p13 = por %p976_p12, %p975_p11 }
 0x149   :  { %p978_p0 = pnand %p977_p13, %p971_p10 }
 0x209   :  { %v709_v42 = vpop.f32.mrb[2].mxu0 }
 0x20a   :  { %v744_v43 = vpop.f32.mrb[2].mxu1  ;;  %v710_v45 = vpop.f32.mrb[3].mxu0 }
 0x20b   :  { %v711_v46 = vadd.f32 %v710_v45, %v709_v42  ;;  %v745_v47 = vpop.f32.mrb[3].mxu1 }
 0x20c   :  { %v746_v48 = vadd.f32 %v745_v47, %v744_v43 }
 0x20d   :  { %v571_v49 = vadd.f32 %v711_v46, %v503_v44 }
 0x20f   :  { %v641_v50 = vadd.f32 %v746_v48, %v571_v49 }
 0x211   :  { %644 = vst [vmem:[#allocation8] sm:$0x3] %v641_v50 }
 0x212   :  { %981 = shalt.err (!%p978_p0)
}
 0x213   :  { %s982_s7 = scalar_lea.hbm %s1172_s9, 32 }
 0x214   :  { %p983_p1 = scmp.ne.s32.totalorder %s1172_s9, %s982_s7  ;;  %p986_p2 = scmp.lt.u32.totalorder %s982_s7, %s1172_s9 }
 0x216   :  { %p988_p3 = pnand %p986_p2, %p983_p1 }
 0x218   :  { %991 = shalt.err (!%p988_p3)
}
 0x219   :  { %666 = dma.vmem_to_hbm [thread:$0]  %s664_s23, 32, %s1172_s9, [#allocation9]  }
 0x21a   :  { %996 = dma.done.wait [#allocation4], 512  }
 0x21b   :  { %997 = vsyncadd [#allocation4], 4294966784 }
 0x21c   :  { %998 = dma.done.wait [#allocation9], 32  }
 0x21d   :  { %999 = vsyncadd [#allocation9], 4294967264 }
 0x21e   :  { %673 = vsyncpa [#allocation3], 1 }
 0x21f   :  { %674 = vsyncpa [#allocation6], 1 }
 0x220   :  { %675 = vsyncpa [#allocation4], 1 }
 0x221   :  { %676 = vsyncpa [#allocation9], 1 }

</bundles_post_ra>
